<compile_context>
chip_gen: v7x
topology: tpu7x:2x2x1
jax: 0.10.0
libtpu: 0.0.40
codegen_flags: <defaults>
</compile_context>

<pallas_src>
import functools

import numpy as np
import jax
import jax.numpy as jnp
from jax import lax
from jax.experimental import pallas as pl
from jax.experimental.pallas import tpu as pltpu


# Big-but-finite "infinity": exp(m - INF) must underflow to 0 in f32 for the
# gamma-scaled recurrence, which holds for any practical soft-DTW setting.
_INF = 1e9


# -----------------------------------------------------------------------------
# Pyramid construction (mirrors get_shrink / reduce_by_half of the module).
# -----------------------------------------------------------------------------
def shrink_lengths(input_len, radius):
    """Lengths of the kernel parameters, coarsest first (== get_shrink order)."""
    min_time_size = radius + 2
    lens = []

    def rec(n):
        if n < min_time_size:
            lens.append(n)
            return
        rec(n // 2)          # reduce_by_half(range(n)) has length n // 2
        lens.append(n)

    rec(input_len)
    return lens


def _reduce_by_half(x):
    """x: (B, T) -> (B, T//2), pairwise mean, drop last element if T is odd."""
    B, T = x.shape
    T2 = T - (T % 2)
    return x[:, :T2].reshape(B, T2 // 2, 2).mean(axis=-1)


def _shrink_to(x, L):
    """Repeatedly halve x (B, T) until its time length equals L (reference)."""
    while x.shape[1] > L:
        x = _reduce_by_half(x)
    assert x.shape[1] == L, (x.shape, L)
    return x


def _round_up(n, m):
    return -(-n // m) * m


# -----------------------------------------------------------------------------
# One-time device probe: pins pltpu.roll's rotation direction so the DP lane
# shifts below are convention-independent ("shift toward higher lanes by 1").
# -----------------------------------------------------------------------------
def _roll_probe_kernel(x_ref, o_ref):
    o_ref[...] = pltpu.roll(x_ref[...], shift=1, axis=1)


@functools.lru_cache(maxsize=None)
def _roll_shift_is_toward_higher_lanes():
    x = jnp.tile(jnp.arange(128, dtype=jnp.float32)[None, :], (8, 1))
    y = pl.pallas_call(
        _roll_probe_kernel,
        out_shape=jax.ShapeDtypeStruct((8, 128), jnp.float32),
        in_specs=[pl.BlockSpec((8, 128), lambda: (0, 0))],
        out_specs=pl.BlockSpec((8, 128), lambda: (0, 0)),
    )(x)
    # shift=+1 toward higher lanes puts old lane 0 (value 0.0) at lane 1.
    return bool(jax.device_get(y[0, 1]) == 0.0)


# -----------------------------------------------------------------------------
# Fused multi-level soft-DTW kernel (all segments in lockstep).
# -----------------------------------------------------------------------------
def _gfsdtw_fused_kernel(x_ref, kseed_ref, meta_ref, o_ref, *,
                         Lmax, q, shift1, nseg):
    """Anti-diagonal soft-DTW DP over every lane segment of every row.

      x_ref     (R, W) f32: lane base+i (i>=1) holds x_scaled[i-1] of its segment.
      kseed_ref (R, W) f32: circular seed; rolling it toward higher lanes by
                            (t-2) puts k_scaled[t-1-i] at lane base+i.
      meta_ref  (R, 128) i32: per-row segment descriptors, (base, len) in lanes
                            (2s, 2s+1); unused slots hold base == W.
      o_ref     (R, W) f32: result slab; lane base+L of each segment holds
                            R[L, L] / gamma after the last diagonal.
    """
    INF = jnp.float32(_INF)
    xs = x_ref[...]                                    # loop invariant
    kw0 = kseed_ref[...]
    R, W = xs.shape

    # ---- hoisted prologue: per-lane masks from the segment descriptors -------
    lane = lax.broadcasted_iota(jnp.int32, (R, W), 1)
    i_rel = jnp.zeros((R, W), jnp.int32)               # DP row index i of this lane
    L_lane = jnp.zeros((R, W), jnp.int32)              # segment length of this lane
    for s in range(nseg):                              # static, tiny, hoisted
        base = meta_ref[:, 2 * s:2 * s + 1]            # (R, 1) int32
        slen = meta_ref[:, 2 * s + 1:2 * s + 2]        # (R, 1) int32
        in_seg = (lane >= base) & (lane <= base + slen)
        i_rel = jnp.where(in_seg, lane - base, i_rel)
        L_lane = jnp.where(in_seg, slen, L_lane)
    act = (i_rel >= 1) & (i_rel <= L_lane)             # non-boundary segment lanes
    # valid DP cell on diagonal t  <=>  rel_lo <= (i - t) <= rel_hi
    rel_lo = jnp.where(act, -L_lane, jnp.int32(1))
    rel_hi = jnp.where(act, jnp.int32(-1), jnp.int32(0))
    # capture R[L, L]: lane i == L on diagonal t == 2L, i.e. rel == -L there.
    cap_rel = jnp.where(act & (i_rel == L_lane), -L_lane, jnp.int32(Lmax + 1))
    rel0 = i_rel - 2                                   # rel at the first diagonal t=2
    # roll(diagonal 0): the seeded R[0,0]/gamma = 0 lands at i == 1 of each segment.
    r_pp_sh0 = jnp.where(i_rel == 1, jnp.float32(0.0), INF)
    r_p0 = jnp.full((R, W), INF, jnp.float32)          # diagonal t = 1 (all INF)
    res0 = jnp.zeros((R, W), jnp.float32)

    qf = float(q)

    def cost_fn(d):          # inputs are pre-scaled, so cost == |x-k|**q / gamma
        if qf == 2.0:
            return d * d                       # no abs / eps / transcendentals
        if qf == int(qf) and qf >= 1.0:
            a = jnp.abs(d)
            out = a
            for _ in range(int(qf) - 1):
                out = out * a
            return out
        return jnp.exp(jnp.float32(qf) * jnp.log(jnp.abs(d) + jnp.float32(1e-12)))

    def body(t, carry):
        # r_pp_sh already holds roll(diag t-2) == last step's r_p_sh (saves a roll).
        r_pp_sh, r_p, kwin, rel, res = carry
        cost = cost_fn(xs - kwin)                            # |x[i-1]-k[j-1]|^q / g
        r_p_sh = pltpu.roll(r_p, shift=shift1, axis=1)       # R[i-1, j]
        m = jnp.minimum(jnp.minimum(r_pp_sh, r_p_sh), r_p)
        z = (jnp.exp(m - r_pp_sh) + jnp.exp(m - r_p_sh) + jnp.exp(m - r_p))
        r_new = cost + (m - jnp.log(z))                      # gamma-scaled softmin
        valid = (rel >= rel_lo) & (rel <= rel_hi)            # const per-lane bounds
        r_new = jnp.where(valid, r_new, INF)
        res = jnp.where(rel == cap_rel, r_new, res)          # capture R[L,L]/gamma
        kwin = pltpu.roll(kwin, shift=shift1, axis=1)        # advance kernel window
        return (r_p_sh, r_new, kwin, rel - 1, res)

    n_steps = 2 * Lmax - 1
    tiles = (R // 8) * (W // 128)
    if n_steps * tiles <= 64:
        unroll = True                       # tiny problems: no loop overhead at all
    else:
        unroll = 8 if tiles <= 2 else 4     # carry chain is serial; unroll only
                                            # trims loop overhead, so keep it modest
    _, _, _, _, res = lax.fori_loop(2, 2 * Lmax + 1, body,
                                    (r_pp_sh0, r_p0, kw0, rel0, res0),
                                    unroll=unroll)
    o_ref[...] = res                        # lane-dense single unmasked store


# -----------------------------------------------------------------------------
# Layout planning: assign every (level, batch) problem to a (row, lane base).
# -----------------------------------------------------------------------------
def _plan_layout(lens, B, layout):
    """Returns (row_of[levels, B], base_of[levels], num_rows, W, packed)."""
    num_levels = len(lens)
    Lmax = max(lens)

    # Candidate A: one (level, batch) problem per row at base 0 (original layout).
    W_u = _round_up(Lmax + 1, 128)
    rows_u = num_levels * B
    cost_u = (_round_up(rows_u, 8) // 8) * (W_u // 128)

    # Candidate B: pack all levels of one batch element into disjoint lane
    # segments of a single row (all levels share the same anti-diagonal clock).
    base_p = np.zeros((num_levels,), np.int32)
    p = 0
    prev_L = None
    for li in sorted(range(num_levels), key=lambda i: lens[i]):
        L = lens[li]
        if prev_L is None:
            p = max(0, L - 2)              # keep this segment's circular seed unwrapped
        else:
            p = p + max(prev_L + 1, L)     # disjoint DP lanes *and* seed windows
        base_p[li] = p
        prev_L = L
    W_p = _round_up(p + prev_L + 1, 128)
    rows_p = B
    cost_p = (_round_up(rows_p, 8) // 8) * (W_p // 128)

    packed = (cost_p <= cost_u) if layout == "auto" else (layout == "packed")
    if packed:
        row_of = np.tile(np.arange(B, dtype=np.int32)[None, :], (num_levels, 1))
        return row_of, base_p, rows_p, W_p, True
    row_of = (np.arange(num_levels, dtype=np.int32)[:, None] * B
              + np.arange(B, dtype=np.int32)[None, :])
    return row_of, np.zeros((num_levels,), np.int32), rows_u, W_u, False


def _pick_row_tile(num_rows, W):
    """Rows per grid step: as many as the vreg budget allows (cross-row ILP is
    the only ILP in this serial DP), but keep >= 2 grid steps when the row count
    allows it so v7x's two TensorCores both get work; never pad rows beyond the
    next multiple of 8 (a padded row costs a full serial DP pass)."""
    wv = max(1, W // 128)
    cap = max(8, ((32 // wv) // 8) * 8)        # ~<=4 live (8,128) row-tiles per op
    r8 = _round_up(num_rows, 8)
    divs = [d for d in range(8, min(cap, r8) + 1, 8) if r8 % d == 0]
    if not divs:
        return 8
    multi = [d for d in divs if r8 // d >= 2]
    return max(multi) if multi else max(divs)


# -----------------------------------------------------------------------------
# Wrapper: build the pyramid + slabs, single pallas_call, gather captures.
# -----------------------------------------------------------------------------
def gfsdtw_forward(x, params, gamma, q, layout="auto"):
    """GFSDTWLayer.forward: x (B, input_len), params = list of 1-D level kernels
    (coarsest first).  Returns v of shape (output_len, B)."""
    x = jnp.asarray(x, jnp.float32)
    B, T = x.shape
    lens = [int(k.shape[0]) for k in params]
    num_levels = len(lens)
    Lmax = lens[-1]
    assert Lmax == max(lens) and T == Lmax, (lens, T)

    row_of, base_of, num_rows, W, _packed = _plan_layout(lens, B, layout)
    ROW_TILE = _pick_row_tile(num_rows, W)
    R_pad = _round_up(num_rows, ROW_TILE)
    grid = (R_pad // ROW_TILE,)

    # Sanity: within a row, DP lanes and circular kernel-seed windows of the
    # segments must be pairwise disjoint (checked once per row pattern).
    groups = {}
    for li in range(num_levels):
        groups.setdefault(int(row_of[li, 0]), []).append(li)
    for lis in groups.values():
        seed_seen, lane_seen = set(), set()
        for li in lis:
            L, base = lens[li], int(base_of[li])
            assert base + L < W, (base, L, W)
            seed = set(np.mod(base + 1 - np.arange(L), W).tolist())
            lanes_ = set(range(base, base + L + 1))
            assert seed_seen.isdisjoint(seed) and lane_seen.isdisjoint(lanes_)
            seed_seen |= seed
            lane_seen |= lanes_

    # Incremental pyramid: one halving per level (finest -> coarsest).
    level_x = [None] * num_levels
    cur = x
    for li in range(num_levels - 1, -1, -1):
        assert cur.shape[1] == lens[li], (cur.shape, lens[li])
        level_x[li] = cur
        if li > 0:
            cur = _reduce_by_half(cur)

    # gamma-scaled inputs: |c*x - c*k|^q == |x - k|^q / gamma  (c = gamma**(-1/q)),
    # so the DP carries R/gamma and the kernel loop has no gamma multiplies.
    c = float((1.0 / float(gamma)) ** (1.0 / float(q)))

    X = jnp.zeros((R_pad, W), jnp.float32)
    K = jnp.zeros((R_pad, W), jnp.float32)
    meta_np = np.full((R_pad, 128), W, np.int32)        # base == W -> empty slot
    slot = np.zeros((R_pad,), np.int32)
    for li in range(num_levels):
        L, base = lens[li], int(base_of[li])
        rows_li = np.asarray(row_of[li])                            # (B,)
        xcols = (base + 1 + np.arange(L))[None, :]                  # (1, L)
        X = X.at[rows_li[:, None], xcols].set(level_x[li] * c)
        kpos = np.mod(base + 1 - np.arange(L), W)[None, :]          # (1, L)
        kvals = jnp.asarray(params[li], jnp.float32) * c
        K = K.at[rows_li[:, None], kpos].set(jnp.broadcast_to(kvals, (B, L)))
        for b in range(B):
            r = int(rows_li[b])
            s = int(slot[r])
            slot[r] += 1
            meta_np[r, 2 * s] = base
            meta_np[r, 2 * s + 1] = L
    nseg = int(slot.max())
    assert 2 * nseg <= 128, nseg
    META = jnp.asarray(meta_np)

    shift1 = 1 if _roll_shift_is_toward_higher_lanes() else (W - 1)

    n_steps = 2 * Lmax - 1
    cost_est = pl.CostEstimate(
        flops=int(R_pad) * W * n_steps * 20,
        transcendentals=int(R_pad) * W * n_steps * 4,
        bytes_accessed=int(R_pad) * (3 * W + 128) * 4)

    kern = functools.partial(_gfsdtw_fused_kernel, Lmax=Lmax, q=float(q),
                             shift1=shift1, nseg=nseg)
    spec_w = pl.BlockSpec((ROW_TILE, W), lambda r: (r, 0))
    spec_m = pl.BlockSpec((ROW_TILE, 128), lambda r: (r, 0))
    out = pl.pallas_call(
        kern,
        out_shape=jax.ShapeDtypeStruct((R_pad, W), jnp.float32),
        grid=grid,
        in_specs=[spec_w, spec_w, spec_m],
        out_specs=spec_w,
        compiler_params=pltpu.CompilerParams(
            # Row tiles are fully independent; with >=2 grid steps this lets the
            # two v7x TensorCores split the row axis (harmless on v5e/v6e).
            dimension_semantics=("parallel",)),
        cost_estimate=cost_est,
    )(X, K, META)

    # Tiny gather of the capture lanes (replaces the old full-slab reduction),
    # then undo the gamma scaling once.
    cap_lanes = np.broadcast_to(
        (base_of + np.asarray(lens, np.int32))[:, None], row_of.shape)
    v = jnp.float32(gamma) * out[row_of, cap_lanes]
    return v


# -----------------------------------------------------------------------------
# Reference (numpy) soft-DTW for a correctness check.
# -----------------------------------------------------------------------------
def _ref_cost(d, q):
    if float(q) == 2.0:
        return d * d
    if float(q).is_integer() and q >= 1:
        return np.abs(d) ** int(q)
    return np.power(np.abs(d) + 1e-12, q)


def _ref_level(xs, k, gamma, q):
    xs = np.asarray(xs, np.float64)
    k = np.asarray(k, np.float64)
    B, L = xs.shape
    out = np.zeros((B,), np.float64)
    for b in range(B):
        D = _ref_cost(xs[b][:, None] - k[None, :], q)
        R = np.full((L + 1, L + 1), _INF, np.float64)
        R[0, 0] = 0.0
        for i in range(1, L + 1):
            for j in range(1, L + 1):
                a, bb, cc = R[i - 1, j - 1], R[i - 1, j], R[i, j - 1]
                m = min(a, bb, cc)
                z = (np.exp(-(a - m) / gamma) + np.exp(-(bb - m) / gamma)
                     + np.exp(-(cc - m) / gamma))
                R[i, j] = D[i - 1, j - 1] + m - gamma * np.log(z)
        out[b] = R[L, L]
    return out


if __name__ == "__main__":
    # Module config (GFSDTWLayer(input_len, gamma, q, radius)), small shapes.
    input_len = 16
    gamma = 0.1
    q = 2.0
    radius = 2
    B = 2

    lens = shrink_lengths(input_len, radius)          # [2, 4, 8, 16]
    key = jax.random.PRNGKey(0)
    keys = jax.random.split(key, len(lens) + 1)
    # deterministic params, same shapes/scale as nn.Parameter(torch.randn(n)/10)
    params = [jax.random.normal(keys[i], (lens[i],), jnp.float32) / 10.0
              for i in range(len(lens))]
    x = jax.random.normal(keys[-1], (B, input_len), jnp.float32)

    # numpy reference (full-band soft-DTW per pyramid level)
    v_ref = np.stack([
        _ref_level(np.asarray(_shrink_to(x, int(k.shape[0]))), np.asarray(k),
                   gamma, q)
        for k in params], axis=0)

    # exercise both the lane-packed and the one-problem-per-row layouts
    for layout in ("auto", "packed", "unpacked"):
        v = jax.block_until_ready(gfsdtw_forward(x, params, gamma, q,
                                                 layout=layout))
        assert v.shape == (len(lens), B), (layout, v.shape)
        assert bool(jnp.all(jnp.isfinite(v))), layout
        np.testing.assert_allclose(np.asarray(v), v_ref, rtol=2e-3, atol=2e-3,
                                   err_msg=layout)

    print("KERNEL_OK")
</pallas_src>

<mosaic_0001>
module attributes {stable_mosaic.version = 11 : i64} {
  func.func @_roll_probe_kernel(%arg0: memref<8x128xf32, #tpu.memory_space<vmem>>, %arg1: memref<8x128xf32, #tpu.memory_space<vmem>>) attributes {dimension_semantics = [], scalar_prefetch = 0 : i64, scratch_operands = 0 : i64, tpu.core_type = #tpu.core_type<tc>} {
    %c0 = arith.constant 0 : index
    %c0_0 = arith.constant 0 : index
    %0 = vector.load %arg0[%c0, %c0_0] : memref<8x128xf32, #tpu.memory_space<vmem>>, vector<8x128xf32>
    %c1_i32 = arith.constant 1 : i32
    %1 = tpu.dynamic_rotate %0 by %c1_i32 dim 1 : vector<8x128xf32>, i32 -> vector<8x128xf32>
    %c0_1 = arith.constant 0 : index
    %c0_2 = arith.constant 0 : index
    %2 = vector.load %arg1[%c0_1, %c0_2] : memref<8x128xf32, #tpu.memory_space<vmem>>, vector<8x128xf32>
    tpu.vector_store %arg1[%c0_1, %c0_2], %1 {strides = array<i32>} : memref<8x128xf32, #tpu.memory_space<vmem>>, vector<8x128xf32>,
    return
  }
}

</mosaic_0001>

<bundles_post_ra>
// kernel: tpu_custom_call.1
= control target key start
LH: loop header
LB: loop body
LE: loop exit
PB: predicated region body
PF: predicated region fallthrough
CT: control target
= control target key end

     0   :  { %6 = vsyncpa [#allocation3], 0  ;;  %s128_s0 = inlined_call_operand.hbm [shape: f32[8,128], index: 0, kind: input, shape index: {}]   ;;  %s129_s1 = inlined_call_operand.hbm [shape: f32[8,128], index: 1, kind: output, shape index: {}]  }
   0x1   :  { %7 = vsyncpa [#allocation4], 0  ;;  %s91_s6 = smov [#allocation2]   ;;  %s43_s10 = scalar_lea.hbm %s128_s0, 128 }
   0x2   :  { %s14_s7 = sshll.u32 %s91_s6, 4  ;;  %p44_p0 = scmp.ne.s32.totalorder %s128_s0, %s43_s10  ;;  %s15_s7 = int_to_ptr.vmem [resolvable:$true] %s14_s7 }
   0x3   :  { %p47_p1 = scmp.lt.u32.totalorder %s43_s10, %s128_s0 }
   0x5   :  { %p49_p2 = pnand %p47_p1, %p44_p0 }
   0x7   :  { %52 = shalt.err (!%p49_p2)
}
   0x8   :  { %s53_s15 = scalar_lea.vmem %s15_s7, 128  ;;  %p58_p4 = scmp.lt.s32.totalorder %s15_s7, %s15_s7 }
   0x9   :  { %p54_p3 = scmp.ne.s32.totalorder %s15_s7, %s53_s15  ;;  %p59_p5 = scmp.lt.s32.totalorder %s53_s15, %s53_s15 }
   0xb   :  { %p60_p6 = por %p59_p5, %p58_p4 }
   0xd   :  { %p61_p7 = pnand %p60_p6, %p54_p3 }
   0xf   :  { %64 = shalt.err (!%p61_p7)
}
  0x10   :  { %17 = dma.hbm_to_vmem [thread:$0]  %s128_s0, 128, %s15_s7, [#allocation3]  }
  0x11   :  { %87 = dma.done.wait [#allocation3], 128  }
  0x12   :  { %88 = vsyncadd [#allocation3], 4294967168  ;;  %v21_v0 = vld [vmem:[#allocation2] sm:$0xff]  ;;  %s92_s18 = smov 1   ;;  %s93_s19 = smov [#allocation5]  }
  0x13   :  { %22 = vrot.lane.b32.xlu0 %v21_v0, %s92_s18  ;;  %s31_s20 = sshll.u32 %s93_s19, 4  ;;  %s32_s20 = int_to_ptr.vmem [resolvable:$true] %s31_s20 }
  0x14   :  { %s65_s21 = scalar_lea.vmem %s32_s20, 128  ;;  %p70_p9 = scmp.lt.s32.totalorder %s32_s20, %s32_s20 }
  0x15   :  { %p66_p8 = scmp.ne.s32.totalorder %s32_s20, %s65_s21  ;;  %p71_p10 = scmp.lt.s32.totalorder %s65_s21, %s65_s21 }
  0x17   :  { %p72_p11 = por %p71_p10, %p70_p9 }
  0x19   :  { %p73_p12 = pnand %p72_p11, %p66_p8 }
  0x85   :  { %v23_v1 = vpop.permute.xlu0 %22 }
  0x86   :  { %24 = vst [vmem:[#allocation5] sm:$0xff] %v23_v1 }
  0x87   :  { %76 = shalt.err (!%p73_p12)
}
  0x88   :  { %s77_s0 = scalar_lea.hbm %s129_s1, 128 }
  0x89   :  { %p78_p13 = scmp.ne.s32.totalorder %s129_s1, %s77_s0  ;;  %p81_p0 = scmp.lt.u32.totalorder %s77_s0, %s129_s1 }
  0x8b   :  { %p83_p1 = pnand %p81_p0, %p78_p13 }
  0x8d   :  { %86 = shalt.err (!%p83_p1)
}
  0x8e   :  { %34 = dma.vmem_to_hbm [thread:$0]  %s32_s20, 128, %s129_s1, [#allocation4]  }
  0x8f   :  { %89 = dma.done.wait [#allocation4], 128  }
  0x90   :  { %90 = vsyncadd [#allocation4], 4294967168 }
  0x91   :  { %38 = vsyncpa [#allocation3], 1 }
  0x92   :  { %39 = vsyncpa [#allocation4], 1 }

</bundles_post_ra>
